<compile_context>
chip_gen: v5e
topology: v5e:2x2
jax: 0.10.0
libtpu: 0.0.40
codegen_flags: <defaults>
</compile_context>

<pallas_src>
import functools
from math import floor

import jax
import jax.numpy as jnp
from jax.experimental import pallas as pl
from jax.experimental.pallas import tpu as pltpu

IEPS_LN_DEFAULT = 1e-6       # ieps_ln_default in the source codebase
ENABLE_LN_PARAMETERS = True  # elementwise_affine


def _cbow_ln_kernel(x_ref, g_ref, b_ref, o_ref, pad_ref, *, swsize, eps):
    # x_ref: (TB, S, D) block of batch elements.
    x = x_ref[...].astype(jnp.float32)
    TB, S, D = x.shape

    # Fill the zero-padded scratch: halo rows <- 0, middle rows <- x.
    if swsize > 0:
        halo = jnp.zeros((TB, swsize, D), jnp.float32)
        pad_ref[:, pl.ds(0, swsize), :] = halo
        pad_ref[:, pl.ds(swsize + S, swsize), :] = halo
    pad_ref[:, pl.ds(swsize, S), :] = x

    # Zero-padded sliding-window sum over the sequence axis, skipping the
    # center tap (off == swsize): acc == window_sum(x) - x.
    acc = jnp.zeros_like(x)
    for off in range(2 * swsize + 1):
        if off == swsize:
            continue
        acc = acc + pad_ref[:, pl.ds(off, S), :]

    # LayerNorm over D — single-pass statistics.
    inv_d = jnp.float32(1.0 / D)
    mean = jnp.sum(acc, axis=-1, keepdims=True) * inv_d
    msq = jnp.sum(acc * acc, axis=-1, keepdims=True) * inv_d
    var = jnp.maximum(msq - mean * mean, 0.0)
    y = (acc - mean) * jax.lax.rsqrt(var + eps)
    if ENABLE_LN_PARAMETERS:
        y = y * g_ref[0] + b_ref[0]
    o_ref[...] = y.astype(o_ref.dtype)


def _pick_batch_block(B, S, D, *, target_bytes=2 << 20, min_steps=8):
    """Fold batch elements per grid step: ~target_bytes/step, >=min_steps steps."""
    if B < 2:
        return 1
    max_tb_bytes = max(1, target_bytes // max(1, S * D * 4))
    max_tb_steps = max(1, B // min_steps) if B >= min_steps else 1
    tb = max(1, min(B, max_tb_bytes, max_tb_steps))
    while B % tb != 0:
        tb -= 1
    return tb


def cbow_input(x, gamma, beta, *, kernel_size):
    """x: (B, S, D); gamma, beta: (D,). Returns (B, S, D) matching CBOWInput.forward."""
    B, S, D = x.shape
    swsize = floor((kernel_size - 1) / 2.0)
    tb = _pick_batch_block(B, S, D)
    n_steps = B // tb

    g2 = gamma.reshape(1, D).astype(jnp.float32)
    b2 = beta.reshape(1, D).astype(jnp.float32)

    kernel = functools.partial(_cbow_ln_kernel, swsize=swsize, eps=IEPS_LN_DEFAULT)

    return pl.pallas_call(
        kernel,
        out_shape=jax.ShapeDtypeStruct((B, S, D), x.dtype),
        grid_spec=pltpu.PrefetchScalarGridSpec(
            num_scalar_prefetch=0,
            grid=(n_steps,),
            in_specs=[
                pl.BlockSpec((tb, S, D), lambda i: (i, 0, 0)),
                pl.BlockSpec((1, D), lambda i: (0, 0)),
                pl.BlockSpec((1, D), lambda i: (0, 0)),
            ],
            out_specs=pl.BlockSpec((tb, S, D), lambda i: (i, 0, 0)),
            scratch_shapes=[
                pltpu.VMEM((tb, S + 2 * swsize, D), jnp.float32),
            ],
        ),
        compiler_params=pltpu.CompilerParams(
            dimension_semantics=("parallel",),
        ),
    )(x, g2, b2)


def cbow_input_ref(x, gamma, beta, *, kernel_size):
    """Pure-JAX reference mirroring the PyTorch forward."""
    swsize = floor((kernel_size - 1) / 2.0)
    S = x.shape[1]
    xp = jnp.pad(x, ((0, 0), (swsize, swsize), (0, 0)))
    wsum = jnp.zeros_like(x)
    for off in range(2 * swsize + 1):
        wsum = wsum + jax.lax.dynamic_slice_in_dim(xp, off, S, axis=1)
    ctx = wsum - x
    mean = jnp.mean(ctx, axis=-1, keepdims=True)
    var = jnp.mean((ctx - mean) ** 2, axis=-1, keepdims=True)
    y = (ctx - mean) * jax.lax.rsqrt(var + IEPS_LN_DEFAULT)
    return y * gamma + beta


if __name__ == "__main__":
    # Small shapes consistent with the module's (batch, seq, isize) input.
    B, S, D = 2, 8, 32
    KERNEL_SIZE = 3

    key = jax.random.PRNGKey(0)
    kx, kg, kb = jax.random.split(key, 3)
    x = jax.random.normal(kx, (B, S, D), dtype=jnp.float32)
    # Deterministic synthetic LayerNorm parameters (elementwise_affine=True).
    gamma = 1.0 + 0.1 * jax.random.normal(kg, (D,), dtype=jnp.float32)
    beta = 0.1 * jax.random.normal(kb, (D,), dtype=jnp.float32)

    out = cbow_input(x, gamma, beta, kernel_size=KERNEL_SIZE)
    out = jax.block_until_ready(out)

    ref = cbow_input_ref(x, gamma, beta, kernel_size=KERNEL_SIZE)
    assert out.shape == (B, S, D)
    assert jnp.allclose(out, ref, atol=1e-5, rtol=1e-5), "mismatch vs reference"

    print("KERNEL_OK")
</pallas_src>

<mosaic_0001>
module attributes {stable_mosaic.version = 11 : i64} {
  func.func @_cbow_ln_kernel(%arg0: i32, %arg1: memref<1x8x32xf32, #tpu.memory_space<vmem>>, %arg2: memref<1x32xf32, #tpu.memory_space<vmem>>, %arg3: memref<1x32xf32, #tpu.memory_space<vmem>>, %arg4: memref<1x8x32xf32, #tpu.memory_space<vmem>>, %arg5: memref<1x10x32xf32, #tpu.memory_space<vmem>>) attributes {dimension_semantics = [#tpu.dimension_semantics<parallel>], iteration_bounds = array<i64: 2>, scalar_prefetch = 0 : i64, scratch_operands = 1 : i64, tpu.core_type = #tpu.core_type<tc>, window_params = [{transform_indices = @transform_0, window_bounds = array<i64: 1, 8, 32>}, {pipeline_mode = #tpu.pipeline_mode<synchronous>, transform_indices = @transform_1, window_bounds = array<i64: 1, 32>}, {pipeline_mode = #tpu.pipeline_mode<synchronous>, transform_indices = @transform_2, window_bounds = array<i64: 1, 32>}, {transform_indices = @transform_3, window_bounds = array<i64: 1, 8, 32>}]} {
    %c0 = arith.constant 0 : index
    %c0_0 = arith.constant 0 : index
    %c0_1 = arith.constant 0 : index
    %0 = vector.load %arg1[%c0, %c0_0, %c0_1] : memref<1x8x32xf32, #tpu.memory_space<vmem>>, vector<1x8x32xf32>
    %cst = arith.constant 0.000000e+00 : f32
    %1 = vector.broadcast %cst : f32 to vector<1x1x32xf32>
    %c0_2 = arith.constant 0 : index
    %c0_3 = arith.constant 0 : index
    %c0_4 = arith.constant 0 : index
    %2 = vector.load %arg5[%c0_2, %c0_3, %c0_4] : memref<1x10x32xf32, #tpu.memory_space<vmem>>, vector<1x1x32xf32>
    tpu.vector_store %arg5[%c0_2, %c0_3, %c0_4], %1 {strides = array<i32>} : memref<1x10x32xf32, #tpu.memory_space<vmem>>, vector<1x1x32xf32>,
    %c0_5 = arith.constant 0 : index
    %c9 = arith.constant 9 : index
    %c0_6 = arith.constant 0 : index
    %3 = vector.load %arg5[%c0_5, %c9, %c0_6] : memref<1x10x32xf32, #tpu.memory_space<vmem>>, vector<1x1x32xf32>
    tpu.vector_store %arg5[%c0_5, %c9, %c0_6], %1 {strides = array<i32>} : memref<1x10x32xf32, #tpu.memory_space<vmem>>, vector<1x1x32xf32>,
    %c0_7 = arith.constant 0 : index
    %c1 = arith.constant 1 : index
    %c0_8 = arith.constant 0 : index
    %4 = vector.load %arg5[%c0_7, %c1, %c0_8] : memref<1x10x32xf32, #tpu.memory_space<vmem>>, vector<1x8x32xf32>
    tpu.vector_store %arg5[%c0_7, %c1, %c0_8], %0 {strides = array<i32>} : memref<1x10x32xf32, #tpu.memory_space<vmem>>, vector<1x8x32xf32>,
    %cst_9 = arith.constant 0.000000e+00 : f32
    %5 = vector.broadcast %cst_9 : f32 to vector<1x8x32xf32>
    %c0_10 = arith.constant 0 : index
    %c0_11 = arith.constant 0 : index
    %c0_12 = arith.constant 0 : index
    %6 = vector.load %arg5[%c0_10, %c0_11, %c0_12] : memref<1x10x32xf32, #tpu.memory_space<vmem>>, vector<1x8x32xf32>
    %7 = arith.addf %5, %6 : vector<1x8x32xf32>
    %c0_13 = arith.constant 0 : index
    %c2 = arith.constant 2 : index
    %c0_14 = arith.constant 0 : index
    %8 = vector.load %arg5[%c0_13, %c2, %c0_14] : memref<1x10x32xf32, #tpu.memory_space<vmem>>, vector<1x8x32xf32>
    %9 = arith.addf %7, %8 : vector<1x8x32xf32>
    %cst_15 = arith.constant dense<0.000000e+00> : vector<1x8xf32>
    %10 = vector.multi_reduction <add>, %9, %cst_15 [2] : vector<1x8x32xf32> to vector<1x8xf32>
    %11 = vector.shape_cast %10 : vector<1x8xf32> to vector<1x8x1xf32>
    %cst_16 = arith.constant 3.125000e-02 : f32
    %12 = vector.broadcast %cst_16 : f32 to vector<1x8x1xf32>
    %13 = arith.mulf %11, %12 : vector<1x8x1xf32>
    %14 = arith.mulf %9, %9 : vector<1x8x32xf32>
    %cst_17 = arith.constant dense<0.000000e+00> : vector<1x8xf32>
    %15 = vector.multi_reduction <add>, %14, %cst_17 [2] : vector<1x8x32xf32> to vector<1x8xf32>
    %16 = vector.shape_cast %15 : vector<1x8xf32> to vector<1x8x1xf32>
    %cst_18 = arith.constant 3.125000e-02 : f32
    %17 = vector.broadcast %cst_18 : f32 to vector<1x8x1xf32>
    %18 = arith.mulf %16, %17 : vector<1x8x1xf32>
    %19 = arith.mulf %13, %13 : vector<1x8x1xf32>
    %20 = arith.subf %18, %19 : vector<1x8x1xf32>
    %cst_19 = arith.constant 0.000000e+00 : f32
    %21 = vector.broadcast %cst_19 : f32 to vector<1x8x1xf32>
    %22 = arith.maximumf %20, %21 : vector<1x8x1xf32>
    %23 = vector.broadcast %13 : vector<1x8x1xf32> to vector<1x8x32xf32>
    %24 = arith.subf %9, %23 : vector<1x8x32xf32>
    %cst_20 = arith.constant 9.99999997E-7 : f32
    %25 = vector.broadcast %cst_20 : f32 to vector<1x8x1xf32>
    %26 = arith.addf %22, %25 : vector<1x8x1xf32>
    %27 = math.rsqrt %26 : vector<1x8x1xf32>
    %28 = vector.broadcast %27 : vector<1x8x1xf32> to vector<1x8x32xf32>
    %29 = arith.mulf %24, %28 : vector<1x8x32xf32>
    %c0_21 = arith.constant 0 : index
    %c0_22 = arith.constant 0 : index
    %30 = vector.load %arg2[%c0_21, %c0_22] : memref<1x32xf32, #tpu.memory_space<vmem>>, vector<1x32xf32>
    %31 = vector.shape_cast %30 : vector<1x32xf32> to vector<32xf32>
    %32 = vector.shape_cast %31 : vector<32xf32> to vector<1x1x32xf32>
    %33 = vector.broadcast %32 : vector<1x1x32xf32> to vector<1x8x32xf32>
    %34 = arith.mulf %29, %33 : vector<1x8x32xf32>
    %c0_23 = arith.constant 0 : index
    %c0_24 = arith.constant 0 : index
    %35 = vector.load %arg3[%c0_23, %c0_24] : memref<1x32xf32, #tpu.memory_space<vmem>>, vector<1x32xf32>
    %36 = vector.shape_cast %35 : vector<1x32xf32> to vector<32xf32>
    %37 = vector.shape_cast %36 : vector<32xf32> to vector<1x1x32xf32>
    %38 = vector.broadcast %37 : vector<1x1x32xf32> to vector<1x8x32xf32>
    %39 = arith.addf %34, %38 : vector<1x8x32xf32>
    %c0_25 = arith.constant 0 : index
    %c0_26 = arith.constant 0 : index
    %c0_27 = arith.constant 0 : index
    %40 = vector.load %arg4[%c0_25, %c0_26, %c0_27] : memref<1x8x32xf32, #tpu.memory_space<vmem>>, vector<1x8x32xf32>
    tpu.vector_store %arg4[%c0_25, %c0_26, %c0_27], %39 {strides = array<i32>} : memref<1x8x32xf32, #tpu.memory_space<vmem>>, vector<1x8x32xf32>,
    return
  }
  func.func @transform_0(%arg0: i32) -> (i32, i32, i32) {
    %c0_i32 = arith.constant 0 : i32
    %c0_i32_0 = arith.constant 0 : i32
    %c0_i32_1 = arith.constant 0 : i32
    return %arg0, %c0_i32, %c0_i32_0 : i32, i32, i32
  }
  func.func @transform_1(%arg0: i32) -> (i32, i32) {
    %c0_i32 = arith.constant 0 : i32
    %c0_i32_0 = arith.constant 0 : i32
    %c0_i32_1 = arith.constant 0 : i32
    return %c0_i32, %c0_i32_0 : i32, i32
  }
  func.func @transform_2(%arg0: i32) -> (i32, i32) {
    %c0_i32 = arith.constant 0 : i32
    %c0_i32_0 = arith.constant 0 : i32
    %c0_i32_1 = arith.constant 0 : i32
    return %c0_i32, %c0_i32_0 : i32, i32
  }
  func.func @transform_3(%arg0: i32) -> (i32, i32, i32) {
    %c0_i32 = arith.constant 0 : i32
    %c0_i32_0 = arith.constant 0 : i32
    %c0_i32_1 = arith.constant 0 : i32
    return %arg0, %c0_i32, %c0_i32_0 : i32, i32, i32
  }
}

</mosaic_0001>

<bundles_post_ra>
// kernel: tpu_custom_call.1
= control target key start
LH: loop header
LB: loop body
LE: loop exit
PB: predicated region body
PF: predicated region fallthrough
CT: control target
= control target key end

     0   :  { %8 = vsyncpa [#allocation4], 0  ;;  %s724_s0 = inlined_call_operand.hbm [shape: f32[2,8,32], index: 0, kind: input, shape index: {}]   ;;  %s725_s1 = inlined_call_operand.hbm [shape: f32[1,32], index: 1, kind: input, shape index: {}]   ;;  %s726_s2 = inlined_call_operand.vmem [shape: f32[1,32], index: 2, kind: input, shape index: {}]   ;;  %s727_s3 = inlined_call_operand.hbm [shape: f32[2,8,32], index: 3, kind: output, shape index: {}]  }
   0x1   :  { %10 = vsyncpa [#allocation4 + $0x1], 0 }
   0x2   :  { %11 = vsyncpa [#allocation7], 0 }
   0x3   :  { %12 = vsyncpa [#allocation5], 0 }
   0x4   :  { %14 = vsyncpa [#allocation5 + $0x1], 0  ;;  %s575_s12 = smov 0   ;;  %s577_s13 = smov 0  }
   0x5   :  { %s579_s14 = smov 0   ;;  %s581_s15 = smov 0  }
   0x6 LB: > { %s596_s16 = sadd.s32 4294967295, %s551_s15   ;;  %s345_s17 = sadd.s32 4294967294, %s551_s15   ;;  %s551_s15 = sphi %s581_s15, %s737_s15   ;;  %s547_s14 = sphi %s579_s14, %s736_s14   ;;  %s543_s13 = sphi %s577_s13, %s735_s13   ;;  %s539_s12 = sphi %s575_s12, %s734_s12  }
   0x7   : > { %p40_p0 = scmp.ne.s32.totalorder %s543_s13, %s539_s12  ;;  %p41_p1 = scmp.eq.s32.totalorder %s596_s16, 0 }
   0x8   : > { %p106_p2 = scmp.eq.s32.totalorder %s596_s16, 1  ;;  %p112_p3 = scmp.eq.s32.totalorder %s345_s17, 1 }
   0x9   : > { %p605_p4 = por %p41_p1, %p40_p0  ;;  %p346_p5 = scmp.ge.s32.totalorder %s551_s15, 1 }
   0xa   : > { %p610_p6 = por %p112_p3, %p40_p0  ;;  %p119_p7 = scmp.lt.s32.totalorder %s551_s15, 3 }
   0xb   : > { %s131_s22 = sshll.u32 %s725_s1, 4  ;;  %s553_s24 = smov [#allocation6]   ;;  %s132_s22 = int_to_ptr.hbm [resolvable:$true] %s131_s22 }
   0xc   : > { %p618_p8 = pnand %p346_p5, %p119_p7  ;;  %s133_s25 = sshll.u32 %s553_s24, 4  ;;  %s134_s25 = int_to_ptr.vmem [resolvable:$true] %s133_s25 }
   0xd   : > { %s628_s26 = sadd.s32 1, %s551_s15   ;;  %s27_s27 = sadd.s32 1, %s547_s14 }
   0xe   : > { %p367_p10 = pneg %p618_p8  ;;  %s24_s28 = ssub.s32 %s551_s15, %s628_s26 }
   0xf   : > { %p25_p12 = scmp.eq.s32.totalorder %s24_s28, 0  ;;  %p34_p13 = scmp.ne.s32.totalorder %s547_s14, %s543_s13 }
  0x10   : > { %p368_p11 = pnand %p367_p10, %p41_p1  ;;  %p35_p0 = scmp.eq.s32.totalorder %s551_s15, 0 }
  0x11   : > { %s637_s29 = scalar_select %p25_p12, %s547_s14, %s27_s27  }
  0x12   : > { %370 = dma.hbm_to_vmem [thread:$0]  (!%p368_p11), %s132_s22, 16, %s134_s25, [#allocation7]  }
  0x13   : > { %p641_p3 = por %p106_p2, %p34_p13  ;;  %p380_p5 = scmp.lt.s32.totalorder %s551_s15, 2 }
  0x14   : > { %s147_s4 = sand.u32 1, %s547_s14   ;;  %s350_s5 = sshll.u32 %s551_s15, 3 }
  0x15   : > { %p36_p7 = por %p35_p0, %p34_p13  ;;  %s349_s6 = sshll.u32 %s147_s4, 3 }
  0x16   : > { %s155_s9 = scalar_lea.hbm %s724_s0, %s350_s5  ;;  %s151_s11 = scalar_lea.vmem [#allocation3], %s349_s6 }
  0x17   : > { %s157_s10 = sshll.u32 %s155_s9, 4  ;;  %s159_s17 = sshll.u32 %s151_s11, 4  ;;  %s158_s10 = int_to_ptr.hbm [resolvable:$true] %s157_s10  ;;  %s160_s17 = int_to_ptr.vmem [resolvable:$true] %s159_s17 }
  0x18   : > { %p651_p10 = pnand %p380_p5, %p36_p7  ;;  %s148_s21 = scalar_lea.sflag [#allocation4], %s147_s4 }
  0x19   : > { %s451_s22 = sshra.s32 %s158_s10, 4  ;;  %s458_s28 = scalar_lea.hbm %s724_s0, 16  ;;  %s452_s22 = int_to_ptr.hbm [resolvable:$true] %s451_s22 }
  0x1a   : > { %s453_s24 = scalar_lea.hbm %s452_s22, 8  ;;  %p455_p11 = pneg %p651_p10 }
  0x1b   : > { %p454_p2 = scmp.ne.s32.totalorder %s452_s22, %s453_s24  ;;  %p459_p0 = scmp.lt.s32.totalorder %s452_s22, %s724_s0 }
  0x1c   : > { %p460_p5 = scmp.lt.s32.totalorder %s458_s28, %s453_s24 }
  0x1d   : > { %p456_p12 = pnand %p455_p11, %p454_p2 }
  0x1e   : > { %p461_p7 = por %p460_p5, %p459_p0 }
  0x1f   : > { %p457_p13 = pneg %p456_p12 }
  0x21   : > { %p462_p9 = pnand %p461_p7, %p457_p13 }
  0x23   : > { %465 = shalt.err (!%p462_p9)
}
  0x24   : > { %374 = dma.hbm_to_vmem [thread:$0]  (!%p651_p10), %s158_s10, 128, %s160_s17, %s148_s21  }
  0x25   : > { %168 = sbr.rel (%p618_p8) target bundleno = 219 (0xdb), region = 32  ;;  %s668_s4 = sand.u32 (!%p618_p8), 1, %s543_s13  }
  0x26   : > { %s352_s7 = sshll.u32 (!%p618_p8), %s668_s4, 3  ;;  %s171_s8 = scalar_lea.sflag (!%p618_p8), [#allocation4], %s668_s4 }
  0x27   : > { %s174_s9 = scalar_lea.vmem (!%p618_p8), [#allocation3], %s352_s7 }
  0x2a   : > { %526 = dma.done.wait (%p605_p4), %s171_s8, 128  }
  0x2b   : > { %528 = vsyncadd (%p605_p4), %s171_s8, 4294967168 }
  0x2c   : > { %530 = dma.done.wait (%p41_p1), [#allocation7], 16  }
  0x2d   : > { %532 = vsyncadd (%p41_p1), [#allocation7], 4294967280  ;;  %vm204_vm0 = vcmask 253952   ;;  %v554_v0 = vmov 0.0   ;;  %vm207_vm1 = vcmask 261120   ;;  %v203_v1 = vld [vmem:[%s174_s9] sm:$0xff] }
  0x2e   : > { %205 = vst.msk [vmem:[#allocation2] sm:$0x1] %vm204_vm0, %v554_v0  ;;  %s356_s18 = sshll.u32 %s596_s16, 3  ;;  %v417_v23 = vld [vmem:[#allocation6] ss:$0 sm:$0xff]  ;;  %s202_s21 = scalar_lea.vmem [#allocation8], %s352_s7 }
  0x2f   : > { %206 = vst.msk [vmem:[#allocation2 + $0x9] sm:$0x1] %vm204_vm0, %v554_v0  ;;  %s260_s11 = scalar_lea.hbm %s727_s3, %s356_s18  ;;  %v418_v26 = vld [vmem:[%s726_s2] ss:$0 sm:$0xff]  ;;  %s262_s16 = sshll.u32 %s202_s21, 4  ;;  %s263_s16 = int_to_ptr.vmem [resolvable:$true] %s262_s16 }
  0x30   : > { %208 = vst.msk [vmem:[#allocation2 + $0x1] sm:$0xff] %vm207_vm1, %v203_v1  ;;  %s264_s22 = sshll.u32 %s260_s11, 4  ;;  %s250_s24 = scalar_lea.sflag [#allocation5], %s668_s4  ;;  %s265_s22 = int_to_ptr.hbm [resolvable:$true] %s264_s22 }
  0x31   : > { %s495_s25 = sshra.s32 %s265_s22, 4  ;;  %s501_s6 = scalar_lea.hbm %s727_s3, 16  ;;  %s496_s25 = int_to_ptr.hbm [resolvable:$true] %s495_s25 }
  0x32   : > { %s497_s27 = scalar_lea.hbm %s496_s25, 8  ;;  %p502_p9 = scmp.lt.s32.totalorder %s496_s25, %s727_s3 }
  0x33   : > { %p498_p1 = scmp.ne.s32.totalorder %s496_s25, %s497_s27  ;;  %p503_p10 = scmp.lt.s32.totalorder %s501_s6, %s497_s27 }
  0x35   : > { %p499_p4 = pnand %p498_p1, %p641_p3  ;;  %p504_p2 = por %p503_p10, %p502_p9 }
  0x37   : > { %v209_v2 = vld [vmem:[#allocation2] sm:$0xff]  ;;  %p500_p8 = pneg %p499_p4 }
  0x38   : > { %v211_v3 = vld [vmem:[#allocation2 + $0x2] sm:$0xff] }
  0x39   : > { %v212_v4 = vadd.f32 %v211_v3, %v209_v2  ;;  %p505_p11 = pnand %p504_p2, %p500_p8 }
  0x3b   : > { %v213_v5 = vsel %vm207_vm1, %v212_v4, 0.0  ;;  %v217_v6 = vmul.f32 %v212_v4, %v212_v4 }
  0x3c   : > { %214 = vadd.xlane.f32.xlu0 %v213_v5 }
  0x3d   : > { %v218_v7 = vsel %vm207_vm1, %v217_v6, 0.0 }
  0x44   : > { %219 = vadd.xlane.f32.xlu0 %v218_v7 }
  0xaf   : > { %v215_v8 = vpop.xlane.xlu0 %214 }
  0xb0   : > { %v216_v9 = vmul.f32 0.03125, %v215_v8 }
  0xb2   : > { %v222_v11 = vmul.f32 %v216_v9, %v216_v9  ;;  %v225_v22 = vsub.f32 %v212_v4, %v216_v9 }
  0xb7   : > { %v220_v10 = vpop.xlane.xlu0 %219 }
  0xb8   : > { %v221_v12 = vmul.f32 0.03125, %v220_v10 }
  0xba   : > { %v223_v13 = vsub.f32 %v221_v12, %v222_v11 }
  0xbc   : > { %v224_v14 = vmax.f32 %v223_v13, 0.0 }
  0xbe   : > { %v226_v15 = vadd.f32 1e-06, %v224_v14 }
  0xc0   : > { %419 = vrsqrt.f32 %v226_v15  ;;  %vm233_vm3 = vweird.f32 %v226_v15 }
  0xc6   : > { %v420_v16 = vpop.eup %419 }
  0xc7   : > { %v228_v17 = vmul.f32 %v420_v16, %v226_v15  ;;  %vm234_vm2 = vweird.f32 %v420_v16 }
  0xc8   : > { %vm235_vm4 = vmor %vm233_vm3, %vm234_vm2 }
  0xc9   : > { %v229_v18 = vmul.f32 %v420_v16, %v228_v17 }
  0xcb   : > { %v230_v19 = vmul.f32 0.5, %v229_v18 }
  0xcd   : > { %v231_v20 = vsub.f32 1.5, %v230_v19 }
  0xcf   : > { %v232_v21 = vmul.f32 %v420_v16, %v231_v20 }
  0xd1   : > { %v236_v24 = vsel %vm235_vm4, %v420_v16, %v232_v21 }
  0xd2   : > { %v237_v25 = vmul.f32 %v236_v24, %v225_v22 }
  0xd4   : > { %v242_v27 = vmul.f32 %v417_v23, %v237_v25 }
  0xd6   : > { %v247_v28 = vadd.f32 %v418_v26, %v242_v27 }
  0xd8   : > { %248 = vst.msk [vmem:[%s202_s21] sm:$0xff] %vm207_vm1, %v247_v28 }
  0xd9   : > { %508 = shalt.err (!%p505_p11)
}
  0xda   : > { %365 = dma.vmem_to_hbm [thread:$0]  (%p641_p3), %s263_s16, 128, %s265_s22, %s250_s24  }
  0xdb PF: > { %s276_s4 = sand.u32 1, %s539_s12   ;;  %p733_p12 = scmp.ge.s32.totalorder %s551_s15, 2 }
  0xdc   : > { %s277_s9 = scalar_lea.sflag [#allocation5], %s276_s4 }
  0xdd   : > { %p376_p13 = pnand %p733_p12, %p610_p6 }
  0xdf   : > { %p377_p0 = pneg %p376_p13 }
  0xe1   : > { %534 = dma.done.wait (%p377_p0), %s277_s9, 128  }
  0xe2   : > { %536 = vsyncadd (%p377_p0), %s277_s9, 4294967168  ;;  %p17_p5 = scmp.ge.s32.totalorder %s628_s26, 4   ;;  %s734_s12 = smov %s543_s13 }
  0xe3   : > { %s735_s13 = smov %s547_s14  ;;  %s736_s14 = smov %s637_s29 }
  0xe4   : > { %s737_s15 = smov %s628_s26  ;;  %19 = sbr.rel (!%p17_p5) target bundleno = 6 (0x6), region = 81 }
  0xe9   :  { %283 = vsyncpa [#allocation4], 1 }
  0xea   :  { %285 = vsyncpa [#allocation4 + $0x1], 1 }
  0xeb   :  { %286 = vsyncpa [#allocation7], 1 }
  0xec   :  { %287 = vsyncpa [#allocation5], 1 }
  0xed   :  { %289 = vsyncpa [#allocation5 + $0x1], 1 }

</bundles_post_ra>
